<compile_context>
chip_gen: v7x
topology: tpu7x:2x2x1
jax: 0.10.0
libtpu: 0.0.40
codegen_flags: <defaults>
</compile_context>

<pallas_src>
import functools

import jax
import jax.numpy as jnp
from jax import lax
from jax.experimental import pallas as pl
from jax.experimental.pallas import tpu as pltpu


def _ce_kernel(logits_ref, tgt_ref, out_ref, *, spatial, tile_s):
    si = pl.program_id(1)

    @pl.when(si == 0)
    def _():
        out_ref[...] = jnp.zeros_like(out_ref)

    logits = logits_ref[0].astype(jnp.float32)              # (C, TILE_S)
    tgt = tgt_ref[0]                                        # (1, TILE_S) int32
    c = logits.shape[0]

    # numerically-stable logsumexp over the class (sublane) axis
    m = jnp.max(logits, axis=0, keepdims=True)              # (1, TILE_S)
    lse = m + jnp.log(jnp.sum(jnp.exp(logits - m), axis=0, keepdims=True))

    # pick the target-class logit (no dynamic gather on TPU): compare+select+sum
    classes = lax.broadcasted_iota(jnp.int32, (c, tile_s), 0)
    picked = jnp.sum(jnp.where(classes == tgt, logits, 0.0),
                     axis=0, keepdims=True)                 # (1, TILE_S)

    per_pos = lse - picked                                  # (1, TILE_S)

    # mask out lanes of a trailing partial spatial block (garbage/NaN safe:
    # jnp.where selects, it does not multiply)
    pos = si * tile_s + lax.broadcasted_iota(jnp.int32, (1, tile_s), 1)
    per_pos = jnp.where(pos < spatial, per_pos, 0.0)

    # lane-wise accumulation into the per-batch resident output block
    out_ref[0] = out_ref[0] + per_pos


def criterion_cross_entropy(output_nchw, target_nhw, *, tile_s=None,
                            logits_block_budget_bytes=2 * 1024 * 1024):
    """CrossEntropyLoss(reduction='mean') for NCHW logits / NHW int targets."""
    n, c, h, w = output_nchw.shape
    s = h * w
    total = n * s

    # Free reshapes: NCHW is contiguous as (N, C, H*W); no transpose pass.
    logits = output_nchw.reshape(n, c, s)
    tgt = target_nhw.reshape(n, 1, s).astype(jnp.int32)

    if tile_s is None:
        # Lane-dense spatial tile, sized toward ~2 MiB of logits per block so
        # the double-buffered working set + f32 temporaries stay well under
        # the 32 MiB scoped-VMEM limit on every generation (incl. v7x).
        itemsize = jnp.dtype(output_nchw.dtype).itemsize
        lane_budget = (logits_block_budget_bytes // (c * itemsize)) // 128 * 128
        tile_s = min(lane_budget, 8192, ((s + 127) // 128) * 128)
        tile_s = int(max(tile_s, 128))

    grid = (n, pl.cdiv(s, tile_s))
    kernel = functools.partial(_ce_kernel, spatial=s, tile_s=tile_s)

    partial_sums = pl.pallas_call(
        kernel,
        out_shape=jax.ShapeDtypeStruct((n, 1, tile_s), jnp.float32),
        grid_spec=pltpu.PrefetchScalarGridSpec(
            num_scalar_prefetch=0,
            grid=grid,
            in_specs=[
                # logits: (1, C, TILE_S) -> C on sublanes, spatial on lanes
                pl.BlockSpec((1, c, tile_s), lambda ni, si: (ni, 0, si)),
                # targets: lane-dense (1, 1, TILE_S)
                pl.BlockSpec((1, 1, tile_s), lambda ni, si: (ni, 0, si)),
            ],
            # per-batch resident accumulator block (written back once per batch)
            out_specs=pl.BlockSpec((1, 1, tile_s), lambda ni, si: (ni, 0, 0)),
        ),
        compiler_params=pltpu.CompilerParams(
            dimension_semantics=("parallel", "arbitrary"),
            vmem_limit_bytes=32 * 1024 * 1024,
        ),
    )(logits, tgt)

    # Tiny finalize: reduce N*TILE_S partials and apply the 'mean' divide.
    return jnp.sum(partial_sums) / jnp.float32(total)


def _reference_cross_entropy(output_nchw, target_nhw):
    # pure-JAX reference mirroring torch.nn.CrossEntropyLoss(reduction='mean')
    n, c, h, w = output_nchw.shape
    logits = jnp.transpose(output_nchw, (0, 2, 3, 1)).reshape(-1, c)
    tgt = target_nhw.reshape(-1)
    logp = jax.nn.log_softmax(logits.astype(jnp.float32), axis=-1)
    picked = jnp.take_along_axis(logp, tgt[:, None], axis=-1)[:, 0]
    return -jnp.mean(picked)


if __name__ == "__main__":
    key = jax.random.PRNGKey(0)
    k1, k2 = jax.random.split(key)

    N, C, H, W = 2, 4, 16, 16
    output = jax.random.normal(k1, (N, C, H, W), dtype=jnp.float32)
    target = jax.random.randint(k2, (N, H, W), 0, C, dtype=jnp.int32)

    loss = criterion_cross_entropy(output, target)
    loss = jax.block_until_ready(loss)

    ref = _reference_cross_entropy(output, target)
    assert jnp.allclose(loss, ref, rtol=1e-5, atol=1e-5), (loss, ref)

    print("KERNEL_OK")
</pallas_src>

<mosaic_0001>
module attributes {stable_mosaic.version = 11 : i64} {
  func.func @_ce_kernel(%arg0: i32, %arg1: i32, %arg2: memref<1x4x256xf32, #tpu.memory_space<vmem>>, %arg3: memref<1x1x256xi32, #tpu.memory_space<vmem>>, %arg4: memref<1x1x256xf32, #tpu.memory_space<vmem>>) attributes {dimension_semantics = [#tpu.dimension_semantics<parallel>, #tpu.dimension_semantics<arbitrary>], iteration_bounds = array<i64: 2, 1>, scalar_prefetch = 0 : i64, scratch_operands = 0 : i64, tpu.core_type = #tpu.core_type<tc>, window_params = [{transform_indices = @transform_0, window_bounds = array<i64: 1, 4, 256>}, {transform_indices = @transform_1, window_bounds = array<i64: 1, 1, 256>}, {transform_indices = @transform_2, window_bounds = array<i64: 1, 1, 256>}]} {
    %c0_i32 = arith.constant 0 : i32
    %0 = arith.cmpi eq, %arg1, %c0_i32 : i32
    %1 = arith.extui %0 : i1 to i32
    %c0_i32_0 = arith.constant 0 : i32
    %2 = arith.cmpi ne, %1, %c0_i32_0 : i32
    scf.if %2 {
      %cst_17 = arith.constant 0.000000e+00 : f32
      %38 = vector.broadcast %cst_17 : f32 to vector<1x1x256xf32>
      %c0_18 = arith.constant 0 : index
      %c0_19 = arith.constant 0 : index
      %c0_20 = arith.constant 0 : index
      %39 = vector.load %arg4[%c0_18, %c0_19, %c0_20] : memref<1x1x256xf32, #tpu.memory_space<vmem>>, vector<1x1x256xf32>
      tpu.vector_store %arg4[%c0_18, %c0_19, %c0_20], %38 {strides = array<i32>} : memref<1x1x256xf32, #tpu.memory_space<vmem>>, vector<1x1x256xf32>,
    } else {
    }
    %c0 = arith.constant 0 : index
    %c0_1 = arith.constant 0 : index
    %c0_2 = arith.constant 0 : index
    %3 = vector.load %arg2[%c0, %c0_1, %c0_2] : memref<1x4x256xf32, #tpu.memory_space<vmem>>, vector<1x4x256xf32>
    %4 = vector.shape_cast %3 : vector<1x4x256xf32> to vector<4x256xf32>
    %c0_3 = arith.constant 0 : index
    %c0_4 = arith.constant 0 : index
    %c0_5 = arith.constant 0 : index
    %5 = vector.load %arg3[%c0_3, %c0_4, %c0_5] : memref<1x1x256xi32, #tpu.memory_space<vmem>>, vector<1x1x256xi32>
    %6 = vector.shape_cast %5 : vector<1x1x256xi32> to vector<1x256xi32>
    %cst = arith.constant dense<0xFF800000> : vector<256xf32>
    %7 = vector.multi_reduction <maximumf>, %4, %cst [0] : vector<4x256xf32> to vector<256xf32>
    %8 = vector.shape_cast %7 : vector<256xf32> to vector<1x256xf32>
    %9 = vector.broadcast %8 : vector<1x256xf32> to vector<4x256xf32>
    %10 = arith.subf %4, %9 : vector<4x256xf32>
    %11 = math.exp %10 : vector<4x256xf32>
    %cst_6 = arith.constant dense<0.000000e+00> : vector<256xf32>
    %12 = vector.multi_reduction <add>, %11, %cst_6 [0] : vector<4x256xf32> to vector<256xf32>
    %13 = vector.shape_cast %12 : vector<256xf32> to vector<1x256xf32>
    %14 = math.log %13 : vector<1x256xf32>
    %15 = arith.addf %8, %14 : vector<1x256xf32>
    %16 = tpu.iota {dimensions = array<i32: 0>} : vector<4x256xi32>
    %17 = vector.broadcast %6 : vector<1x256xi32> to vector<4x256xi32>
    %18 = arith.cmpi eq, %16, %17 : vector<4x256xi32>
    %cst_7 = arith.constant 0.000000e+00 : f32
    %19 = vector.broadcast %cst_7 : f32 to vector<4x256xf32>
    %20 = arith.select %18, %4, %19 : vector<4x256xi1>, vector<4x256xf32>
    %cst_8 = arith.constant dense<0.000000e+00> : vector<256xf32>
    %21 = vector.multi_reduction <add>, %20, %cst_8 [0] : vector<4x256xf32> to vector<256xf32>
    %22 = vector.shape_cast %21 : vector<256xf32> to vector<1x256xf32>
    %23 = arith.subf %15, %22 : vector<1x256xf32>
    %c256_i32 = arith.constant 256 : i32
    %24 = arith.muli %arg1, %c256_i32 : i32
    %25 = tpu.iota {dimensions = array<i32: 1>} : vector<1x256xi32>
    %26 = vector.broadcast %24 : i32 to vector<1x256xi32>
    %27 = arith.addi %26, %25 : vector<1x256xi32>
    %c256_i32_9 = arith.constant 256 : i32
    %28 = vector.broadcast %c256_i32_9 : i32 to vector<1x256xi32>
    %29 = arith.cmpi slt, %27, %28 : vector<1x256xi32>
    %cst_10 = arith.constant 0.000000e+00 : f32
    %30 = vector.broadcast %cst_10 : f32 to vector<1x256xf32>
    %31 = arith.select %29, %23, %30 : vector<1x256xi1>, vector<1x256xf32>
    %c0_11 = arith.constant 0 : index
    %c0_12 = arith.constant 0 : index
    %c0_13 = arith.constant 0 : index
    %32 = vector.load %arg4[%c0_11, %c0_12, %c0_13] : memref<1x1x256xf32, #tpu.memory_space<vmem>>, vector<1x1x256xf32>
    %33 = vector.shape_cast %32 : vector<1x1x256xf32> to vector<1x256xf32>
    %34 = arith.addf %33, %31 : vector<1x256xf32>
    %c0_14 = arith.constant 0 : index
    %c0_15 = arith.constant 0 : index
    %c0_16 = arith.constant 0 : index
    %35 = vector.load %arg4[%c0_14, %c0_15, %c0_16] : memref<1x1x256xf32, #tpu.memory_space<vmem>>, vector<1x1x256xf32>
    %36 = vector.shape_cast %35 : vector<1x1x256xf32> to vector<1x256xf32>
    %37 = vector.shape_cast %34 : vector<1x256xf32> to vector<1x1x256xf32>
    tpu.vector_store %arg4[%c0_14, %c0_15, %c0_16], %37 {strides = array<i32>} : memref<1x1x256xf32, #tpu.memory_space<vmem>>, vector<1x1x256xf32>,
    return
  }
  func.func @transform_0(%arg0: i32, %arg1: i32) -> (i32, i32, i32) {
    %c0_i32 = arith.constant 0 : i32
    %c0_i32_0 = arith.constant 0 : i32
    return %arg0, %c0_i32, %arg1 : i32, i32, i32
  }
  func.func @transform_1(%arg0: i32, %arg1: i32) -> (i32, i32, i32) {
    %c0_i32 = arith.constant 0 : i32
    %c0_i32_0 = arith.constant 0 : i32
    return %arg0, %c0_i32, %arg1 : i32, i32, i32
  }
  func.func @transform_2(%arg0: i32, %arg1: i32) -> (i32, i32, i32) {
    %c0_i32 = arith.constant 0 : i32
    %c0_i32_0 = arith.constant 0 : i32
    %c0_i32_1 = arith.constant 0 : i32
    return %arg0, %c0_i32, %c0_i32_0 : i32, i32, i32
  }
}

</mosaic_0001>

<bundles_post_ra>
// kernel: tpu_custom_call.1
= control target key start
LH: loop header
LB: loop body
LE: loop exit
PB: predicated region body
PF: predicated region fallthrough
CT: control target
= control target key end

     0   :  { %7 = vsyncpa [#allocation3], 0  ;;  %s968_s0 = inlined_call_operand.hbm [shape: f32[2,4,256], index: 0, kind: input, shape index: {}]   ;;  %s969_s1 = inlined_call_operand.hbm [shape: s32[2,1,256], index: 1, kind: input, shape index: {}]   ;;  %s970_s2 = inlined_call_operand.hbm [shape: f32[2,1,256], index: 2, kind: output, shape index: {}]  }
   0x1   :  { %9 = vsyncpa [#allocation3 + $0x1], 0 }
   0x2   :  { %10 = vsyncpa [#allocation6], 0 }
   0x3   :  { %12 = vsyncpa [#allocation6 + $0x1], 0 }
   0x4   :  { %13 = vsyncpa [#allocation4], 0 }
   0x5   :  { %15 = vsyncpa [#allocation4 + $0x1], 0  ;;  %s733_s9 = smov 0   ;;  %s735_s10 = smov 0  }
   0x6   :  { %s737_s11 = smov 0   ;;  %s739_s12 = smov 0  }
   0x7   :  { %s741_s13 = smov 0   ;;  %s743_s14 = smov 0  }
   0x8 LB: > { %s467_s15 = sadd.s32 4294967295, %s711_s14   ;;  %s468_s16 = sadd.s32 4294967294, %s711_s14   ;;  %s711_s14 = sphi %s743_s14, %s21_s14   ;;  %s707_s13 = sphi %s741_s13, %s992_s13   ;;  %s703_s12 = sphi %s739_s12, %s991_s12   ;;  %s699_s11 = sphi %s737_s11, %s990_s11   ;;  %s695_s10 = sphi %s735_s10, %s989_s10   ;;  %s691_s9 = sphi %s733_s9, %s988_s9  }
   0x9   : > { %s33_s17 = sadd.s32 1, %s707_s13  ;;  %s42_s18 = sadd.s32 1, %s699_s11 }
   0xa   : > { %p35_p0 = scmp.ge.s32.totalorder %s33_s17, 2  ;;  %p49_p1 = scmp.ne.s32.totalorder %s699_s11, %s695_s10 }
   0xb   : > { %p50_p2 = scmp.eq.s32.totalorder %s711_s14, 0  ;;  %p55_p3 = scmp.ne.s32.totalorder %s695_s10, %s691_s9 }
   0xc   : > { %s994_s17 = smov (%p35_p0, %s33_s17), 0  ;;  %p56_p5 = scmp.eq.s32.totalorder %s467_s15, 0 }
   0xd   : > { %p774_p4 = por %p50_p2, %p49_p1  ;;  %s37_s20 = ssub.s32 %s707_s13, %s994_s17 }
   0xe   : > { %p107_p6 = scmp.eq.s32.totalorder %s467_s15, 1  ;;  %p40_p7 = scmp.eq.s32.totalorder %s37_s20, 0 }
   0xf   : > { %p780_p8 = por %p56_p5, %p55_p3  ;;  %p113_p10 = scmp.eq.s32.totalorder %s468_s16, 1 }
  0x10   : > { %p784_p9 = por %p107_p6, %p49_p1  ;;  %p506_p13 = scmp.lt.s32.totalorder %s711_s14, 2 }
  0x11   : > { %s974_s21 = scalar_select %p780_p8, 1, 0 }
  0x12   : > { %s975_s22 = scalar_select %p784_p9, 1, 0 }
  0x13   : > { %s789_s23 = scalar_select %p40_p7, %s699_s11, %s42_s18  }
  0x14   : > { %p791_p11 = por %p113_p10, %p55_p3  ;;  %s798_s25 = sand.u32 1, %s699_s11  }
  0x15   : > { %s471_s26 = sshll.u32 %s798_s25, 3  ;;  %s486_s27 = sshll.u32 %s707_s13, 7 }
  0x16   : > { %s976_s24 = scalar_select %p791_p11, 1, 0 }
  0x17   : > { %s805_s30 = scalar_lea.hbm %s968_s0, %s486_s27  ;;  %s137_s3 = scalar_lea.vmem [#allocation2], %s471_s26 }
  0x18   : > { %s147_s4 = sshll.u32 %s137_s3, 4  ;;  %p811_p0 = pnand %p506_p13, %p774_p4  ;;  %s807_s4 = int_to_ptr.vmem [resolvable:$true] %s147_s4 }
  0x19   : > { %s134_s6 = scalar_lea.sflag [#allocation3], %s798_s25  ;;  %s565_s7 = scalar_lea.hbm %s805_s30, 128 }
  0x1a   : > { %p566_p3 = scmp.ne.s32.totalorder %s805_s30, %s565_s7  ;;  %p567_p5 = pneg %p811_p0 }
  0x1b   : > { %s570_s16 = scalar_lea.hbm %s968_s0, 256  ;;  %p571_p4 = scmp.lt.u32.totalorder %s805_s30, %s968_s0 }
  0x1c   : > { %p568_p6 = pnand %p567_p5, %p566_p3  ;;  %p572_p10 = scmp.lt.u32.totalorder %s570_s16, %s565_s7 }
  0x1d   : > { %p574_p12 = scmp.lt.u32.totalorder %s565_s7, %s805_s30 }
  0x1e   : > { %p569_p7 = pneg %p568_p6  ;;  %p573_p13 = por %p572_p10, %p571_p4 }
  0x20   : > { %p575_p1 = por %p574_p12, %p573_p13 }
  0x22   : > { %p576_p2 = pnand %p575_p1, %p569_p7 }
  0x24   : > { %579 = shalt.err (!%p576_p2)
}
  0x25   : > { %s580_s20 = scalar_lea.vmem %s807_s4, 128  ;;  %s713_s26 = smov [#allocation2]  }
  0x26   : > { %p581_p3 = scmp.ne.s32.totalorder %s807_s4, %s580_s20  ;;  %s585_s27 = sshll.u32 %s713_s26, 4  ;;  %s586_s27 = int_to_ptr.vmem [resolvable:$false] %s585_s27 }
  0x27   : > { %s587_s28 = scalar_lea.vmem %s586_s27, 256  ;;  %p588_p9 = scmp.lt.s32.totalorder %s807_s4, %s586_s27 }
  0x28   : > { %p583_p6 = pnand %p581_p3, %p567_p5  ;;  %p589_p4 = scmp.lt.s32.totalorder %s587_s28, %s580_s20 }
  0x2a   : > { %p584_p11 = pneg %p583_p6  ;;  %p590_p10 = por %p589_p4, %p588_p9 }
  0x2c   : > { %p591_p12 = pnand %p590_p10, %p584_p11 }
  0x2e   : > { %594 = shalt.err (!%p591_p12)
}
  0x2f   : > { %498 = dma.hbm_to_vmem [thread:$0]  (!%p811_p0), %s805_s30, 128, %s807_s4, %s134_s6  }
  0x30   : > { %p978_p1 = scmp.lt.s32.totalorder %s711_s14, 3  ;;  %p979_p2 = scmp.ge.s32.totalorder %s711_s14, 1 }
  0x31   : > { %s474_s3 = sshll.u32 %s798_s25, 1  ;;  %s487_s7 = sshll.u32 %s707_s13, 5 }
  0x32   : > { %p847_p7 = pnand %p979_p2, %p978_p1  ;;  %s856_s16 = scalar_lea.hbm %s969_s1, %s487_s7 }
  0x33   : > { %s158_s18 = scalar_lea.vmem [#allocation5], %s474_s3  ;;  %s155_s30 = scalar_lea.sflag [#allocation6], %s798_s25 }
  0x34   : > { %s980_s29 = scalar_select %p847_p7, 1, 0 }
  0x35   : > { %s168_s19 = sshll.u32 %s158_s18, 4  ;;  %s595_s4 = scalar_lea.hbm %s856_s16, 32  ;;  %s169_s19 = int_to_ptr.vmem [resolvable:$true] %s168_s19 }
  0x36   : > { %p596_p9 = scmp.ne.s32.totalorder %s856_s16, %s595_s4  ;;  %s600_s26 = scalar_lea.hbm %s969_s1, 64 }
  0x37   : > { %p601_p3 = scmp.lt.u32.totalorder %s856_s16, %s969_s1  ;;  %p602_p6 = scmp.lt.u32.totalorder %s600_s26, %s595_s4 }
  0x38   : > { %p598_p11 = pnand %p596_p9, %p567_p5  ;;  %p604_p10 = scmp.lt.u32.totalorder %s595_s4, %s856_s16 }
  0x39   : > { %p603_p4 = por %p602_p6, %p601_p3 }
  0x3a   : > { %p599_p13 = pneg %p598_p11 }
  0x3b   : > { %p605_p12 = por %p604_p10, %p603_p4 }
  0x3d   : > { %p606_p1 = pnand %p605_p12, %p599_p13 }
  0x3f   : > { %609 = shalt.err (!%p606_p1)
}
  0x40   : > { %s610_s25 = scalar_lea.vmem %s169_s19, 32  ;;  %s714_s3 = smov [#allocation5]  }
  0x41   : > { %p611_p2 = scmp.ne.s32.totalorder %s169_s19, %s610_s25  ;;  %s615_s7 = sshll.u32 %s714_s3, 4  ;;  %s616_s7 = int_to_ptr.vmem [resolvable:$false] %s615_s7 }
  0x42   : > { %s617_s8 = scalar_lea.vmem %s616_s7, 64  ;;  %p618_p8 = scmp.lt.s32.totalorder %s169_s19, %s616_s7 }
  0x43   : > { %p613_p9 = pnand %p611_p2, %p567_p5  ;;  %p619_p7 = scmp.lt.s32.totalorder %s617_s8, %s610_s25 }
  0x45   : > { %p614_p11 = pneg %p613_p9  ;;  %p620_p3 = por %p619_p7, %p618_p8 }
  0x47   : > { %p621_p6 = pnand %p620_p3, %p614_p11 }
  0x49   : > { %624 = shalt.err (!%p621_p6)
}
  0x4a   : > { %501 = dma.hbm_to_vmem [thread:$0]  (!%p811_p0), %s856_s16, 32, %s169_s19, %s155_s30  }
  0x4b   : > { %p981_p13 = scmp.ne.s32.totalorder %s980_s29, 0 }
  0x4c   : > { %s881_s15 = sand.u32 (!%p981_p13), 1, %s695_s10   ;;  %p982_p5 = scmp.ne.s32.totalorder (!%p981_p13), %s974_s21, 0 }
  0x4d   : > { %177 = sbr.rel (%p981_p13) target bundleno = 175 (0xaf), region = 28  ;;  %s478_s18 = sshll.u32 (!%p981_p13), %s881_s15, 3 }
  0x4e   : > { %s180_s4 = scalar_lea.sflag (!%p981_p13), [#allocation3], %s881_s15  ;;  %s183_s6 = scalar_lea.vmem (!%p981_p13), [#allocation2], %s478_s18 }
  0x54   : > { %678 = dma.done.wait (%p982_p5), %s180_s4, 128  }
  0x55   : > { %680 = vsyncadd (%p982_p5), %s180_s4, 4294967168  ;;  %s479_s5 = sshll.u32 %s881_s15, 1  ;;  %s189_s29 = scalar_lea.sflag [#allocation6], %s881_s15 }
  0x56   : > { %s192_s16 = scalar_lea.vmem [#allocation5], %s479_s5 }
  0x57   : > { %682 = dma.done.wait (%p982_p5), %s189_s29, 32  }
  0x58   : > { %684 = vsyncadd (%p982_p5), %s189_s29, 4294967264  ;;  %v224_v0 = vlaneseq  ;;  %s899_s19 = scalar_lea.vmem [#allocation7], %s479_s5  ;;  %v715_v2 = vmov 0.0   ;;  %vm234_vm1 = vcmask 1043456   ;;  %v229_v3 = vld [vmem:[%s183_s6] sm:$0xff]  ;;  %s488_s21 = sshll.u32 %s703_s12, 5 }
  0x59   : > { %v232_v4 = vcombine.high %v229_v3, %v229_v3  ;;  %v235_v5 = vsel %vm234_vm1, %v229_v3, -inf  ;;  %v230_v24 = vld [vmem:[%s192_s16] sm:$0x3]  ;;  %v716_v58 = vmov 1966171168   ;;  %s360_s30 = sshll.u32 %s899_s19, 4  ;;  %s916_s27 = scalar_lea.hbm %s970_s2, %s488_s21  ;;  %s918_s30 = int_to_ptr.vmem [resolvable:$true] %s360_s30 }
  0x5a   : > { %vm895_vm0 = vcmp.lt.s32.totalorder %v224_v0, 256  ;;  %v236_v6 = vrot.slane %v235_v5, 4  ;;  %v280_v20 = vshrl.u32 %v224_v0, 7  ;;  %v325_v59 = vunpack.c.l.s4 %v716_v58  ;;  %s346_s28 = scalar_lea.sflag [#allocation4], %s881_s15  ;;  %s625_s25 = scalar_lea.vmem %s918_s30, 32 }
  0x5b   : > { %228 = vst.msk [vmem:[%s899_s19] sm:$0x3] %vm895_vm0, %v715_v2  ;;  %v242_v7 = vsel %vm234_vm1, %v232_v4, -inf  ;;  %p626_p8 = scmp.ne.s32.totalorder %s918_s30, %s625_s25  ;;  %p985_p0 = scmp.ne.s32.totalorder %s975_s22, 0 }
  0x5c   : > { %v237_v8 = vmax.f32 %v235_v5, %v236_v6  ;;  %v243_v9 = vrot.slane %v242_v7, 4  ;;  %v283_v23 = vsub.s32 0, %v280_v20  ;;  %v287_v25 = vsub.s32 1, %v280_v20  ;;  %s717_s12 = smov [#allocation7]  }
  0x5d   : > { %p627_p7 = pnand %p626_p8, %p985_p0  ;;  %s629_s3 = sshll.u32 %s717_s12, 4  ;;  %s630_s3 = int_to_ptr.vmem [resolvable:$false] %s629_s3 }
  0x5e   : > { %v238_v10 = vrot.slane %v237_v8, 2  ;;  %v244_v11 = vmax.f32 %v242_v7, %v243_v9  ;;  %v284_v26 = vrot.slane %v230_v24, %v283_v23  ;;  %v288_v27 = vrot.slane %v230_v24, %v287_v25  ;;  %s631_s7 = scalar_lea.vmem %s630_s3, 64  ;;  %p632_p10 = scmp.lt.s32.totalorder %s918_s30, %s630_s3 }
  0x5f   : > { %p628_p4 = pneg %p627_p7  ;;  %p633_p12 = scmp.lt.s32.totalorder %s631_s7, %s625_s25 }
  0x60   : > { %v239_v12 = vmax.f32 %v237_v8, %v238_v10  ;;  %v245_v13 = vrot.slane %v244_v11, 2  ;;  %vm289_vm2 = vcmp.eq.s32.totalorder %v280_v20, %v284_v26  ;;  %vm290_vm3 = vcmp.eq.s32.totalorder %v280_v20, %v288_v27 }
  0x61   : > { %v291_v28 = vsel %vm289_vm2, %v229_v3, 0.0  ;;  %v292_v32 = vsel %vm290_vm3, %v232_v4, 0.0  ;;  %v326_v4 = vunpack.c.0.s8 %v325_v59  ;;  %p634_p1 = por %p633_p12, %p632_p10 }
  0x62   : > { %v240_v14 = vrot.slane %v239_v12, 1  ;;  %v246_v15 = vmax.f32 %v244_v11, %v245_v13  ;;  %v293_v34 = vsel %vm234_vm1, %v291_v28, 0.0  ;;  %v300_v38 = vsel %vm234_vm1, %v292_v32, 0.0  ;;  %v320_v11 = vld [vmem:[%s899_s19] sm:$0x3] }
  0x63   : > { %v294_v39 = vrot.slane %v293_v34, 4  ;;  %v301_v42 = vrot.slane %v300_v38, 4  ;;  %v329_v8 = vsub.s32 %v326_v4, %v280_v20  ;;  %p635_p2 = pnand %p634_p1, %p628_p4 }
  0x64   : > { %v241_v16 = vmax.f32 %v239_v12, %v240_v14  ;;  %v247_v17 = vrot.slane %v246_v15, 1 }
  0x65   : > { %v295_v45 = vadd.f32 %v294_v39, %v293_v34  ;;  %v302_v48 = vadd.f32 %v301_v42, %v300_v38 }
  0x66   : > { %v248_v18 = vmax.f32 %v246_v15, %v247_v17 }
  0x67   : > { %v296_v51 = vrot.slane %v295_v45, 2  ;;  %v303_v53 = vrot.slane %v302_v48, 2 }
  0x68   : > { %v251_v19 = vcombine.low %v241_v16, %v248_v18 }
  0x69   : > { %v297_v54 = vadd.f32 %v296_v51, %v295_v45  ;;  %v304_v55 = vadd.f32 %v303_v53, %v302_v48 }
  0x6a   : > { %v253_v21 = vsub.f32 %v229_v3, %v251_v19 }
  0x6b   : > { %v298_v56 = vrot.slane %v297_v54, 1  ;;  %v305_v57 = vrot.slane %v304_v55, 1 }
  0x6c   : > { %v254_v22 = vmul.f32 1.442695, %v253_v21 }
  0x6d   : > { %v299_v62 = vadd.f32 %v298_v56, %v297_v54  ;;  %v306_v3 = vadd.f32 %v305_v57, %v304_v55 }
  0x6e   : > { %559 = vpow2.f32 %v254_v22 }
  0x78   : > { %v560_v29 = vpop.eup %559 }
  0x79   : > { %v257_v30 = vcombine.high %v560_v29, %v560_v29  ;;  %v259_v31 = vsel %vm234_vm1, %v560_v29, 0.0 }
  0x7a   : > { %v260_v33 = vrot.slane %v259_v31, 4 }
  0x7b   : > { %v266_v35 = vsel %vm234_vm1, %v257_v30, 0.0 }
  0x7c   : > { %v261_v36 = vadd.f32 %v260_v33, %v259_v31  ;;  %v267_v37 = vrot.slane %v266_v35, 4 }
  0x7e   : > { %v262_v40 = vrot.slane %v261_v36, 2  ;;  %v268_v41 = vadd.f32 %v267_v37, %v266_v35 }
  0x80   : > { %v263_v43 = vadd.f32 %v262_v40, %v261_v36  ;;  %v269_v44 = vrot.slane %v268_v41, 2 }
  0x82   : > { %v264_v46 = vrot.slane %v263_v43, 1  ;;  %v270_v47 = vadd.f32 %v269_v44, %v268_v41 }
  0x84   : > { %v265_v49 = vadd.f32 %v264_v46, %v263_v43  ;;  %v271_v50 = vrot.slane %v270_v47, 1 }
  0x86   : > { %v272_v52 = vadd.f32 %v271_v50, %v270_v47  ;;  %561 = vlog2.f32 %v265_v49 }
  0x88   : > { %563 = vlog2.f32 %v272_v52 }
  0x90   : > { %v562_v60 = vpop.eup %561 }
  0x91   : > { %v274_v61 = vmul.f32 0.6931472, %v562_v60 }
  0x92   : > { %v564_v63 = vpop.eup %563 }
  0x93   : > { %v276_v0 = vmul.f32 0.6931472, %v564_v63  ;;  %v277_v2 = vadd.f32 %v274_v61, %v241_v16 }
  0x95   : > { %v278_v5 = vadd.f32 %v276_v0, %v248_v18  ;;  %v307_v6 = vsub.f32 %v277_v2, %v299_v62 }
  0x97   : > { %v308_v7 = vsub.f32 %v278_v5, %v306_v3 }
  0x99   : > { %v323_v9 = vcombine.low %v307_v6, %v308_v7 }
  0x9b   : > { %v330_v10 = vrot.slane %v323_v9, %v329_v8 }
  0x9d   : > { %v337_v12 = vrot.slane %v330_v10, %v329_v8 }
  0x9f   : > { %v339_v13 = vadd.f32 %v337_v12, %v320_v11 }
  0xa1   : > { %344 = vst.msk [vmem:[%s899_s19] sm:$0x3] %vm895_vm0, %v339_v13 }
  0xa2   : > { %638 = shalt.err (!%p635_p2)
}
  0xa3   : > { %s639_s8 = scalar_lea.hbm %s916_s27, 32  ;;  %s643_s4 = scalar_lea.hbm %s970_s2, 64 }
  0xa4   : > { %p640_p9 = scmp.ne.s32.totalorder %s916_s27, %s639_s8  ;;  %p644_p6 = scmp.lt.u32.totalorder %s916_s27, %s970_s2 }
  0xa5   : > { %p645_p13 = scmp.lt.u32.totalorder %s643_s4, %s639_s8  ;;  %p647_p8 = scmp.lt.u32.totalorder %s639_s8, %s916_s27 }
  0xa6   : > { %p641_p11 = pnand %p640_p9, %p985_p0 }
  0xa7   : > { %p646_p5 = por %p645_p13, %p644_p6 }
  0xa8   : > { %p642_p3 = pneg %p641_p11 }
  0xa9   : > { %p648_p7 = por %p647_p8, %p646_p5 }
  0xab   : > { %p649_p4 = pnand %p648_p7, %p642_p3 }
  0xad   : > { %652 = shalt.err (!%p649_p4)
}
  0xae   : > { %493 = dma.vmem_to_hbm [thread:$0]  (%p985_p0), %s918_s30, 32, %s916_s27, %s346_s28  }
  0xaf PF: > { %s372_s29 = sand.u32 1, %s691_s9   ;;  %p986_p10 = scmp.ne.s32.totalorder %s976_s24, 0 }
  0xb0   : > { %p987_p12 = scmp.ge.s32.totalorder %s711_s14, 2  ;;  %s373_s16 = scalar_lea.sflag [#allocation4], %s372_s29 }
  0xb2   : > { %p503_p1 = pnand %p987_p12, %p986_p10 }
  0xb4   : > { %686 = dma.done.wait (!%p503_p1), %s373_s16, 32  }
  0xb5   : > { %688 = vsyncadd (!%p503_p1), %s373_s16, 4294967264  ;;  %s21_s14 = sadd.s32 1, %s711_s14   ;;  %s988_s9 = smov %s695_s10 }
  0xb6   : > { %p18_p2 = scmp.ge.s32.totalorder %s21_s14, 4   ;;  %s989_s10 = smov %s699_s11 }
  0xb7   : > { %s990_s11 = smov %s789_s23  ;;  %s991_s12 = smov %s707_s13 }
  0xb8   : > { %s992_s13 = smov %s994_s17  ;;  %20 = sbr.rel (!%p18_p2) target bundleno = 8 (0x8), region = 90 }
  0xbf   :  { %378 = vsyncpa [#allocation3], 1 }
  0xc0   :  { %380 = vsyncpa [#allocation3 + $0x1], 1 }
  0xc1   :  { %381 = vsyncpa [#allocation6], 1 }
  0xc2   :  { %383 = vsyncpa [#allocation6 + $0x1], 1 }
  0xc3   :  { %384 = vsyncpa [#allocation4], 1 }
  0xc4   :  { %386 = vsyncpa [#allocation4 + $0x1], 1 }

</bundles_post_ra>
